<compile_context>
chip_gen: v5e
topology: v5e:2x2
jax: 0.10.0
libtpu: 0.0.40
codegen_flags: <defaults>
</compile_context>

<pallas_src>
import jax
import jax.numpy as jnp
from jax.experimental import pallas as pl
from jax.experimental.pallas import tpu as pltpu

# Model hyper-parameters (from the PyTorch module).
NS = 8          # number of states per group (3 groups -> fc2 out = 3*NS = 24)
H_DIM = 26
Z_DIM = 4


def _decoder_kernel(z_ref, p1_ref, p2_ref, recon_ref):
    """Decoder forward on one batch tile; batch sits on the lane (last) axis.

    z_ref:     (Z_DIM, TB)        latent codes, transposed
    p1_ref:    (H_DIM, Z_DIM+1)   [W1 | b1]  (PyTorch (out, in) layout + bias col)
    p2_ref:    (3*NS, H_DIM+1)    [W2 | b2]
    recon_ref: (3*NS, TB)         softmax(dim=1 of the (B,3,NS) view), transposed
    """
    zt = z_ref[...]                                     # (Z_DIM, TB)

    p1 = p1_ref[...]
    w1 = p1[:, :Z_DIM]                                  # (H, Z)
    b1 = p1[:, Z_DIM:]                                  # (H, 1)
    p2 = p2_ref[...]
    w2 = p2[:, :H_DIM]                                  # (3*NS, H)
    b2 = p2[:, H_DIM:]                                  # (3*NS, 1)

    # fc1 + ReLU  ->  (H, TB)
    h1 = jnp.dot(w1, zt, preferred_element_type=jnp.float32) + b1
    h1 = jnp.maximum(h1, 0.0)

    # fc2 -> (3*NS, TB). Row g*NS + s corresponds to (group g, state s) of the
    # (B, 3, NS) view, so softmax over dim=1 == softmax over the three NS-row
    # blocks (NS == 8 -> each block is exactly one 8-sublane tile).
    logits = jnp.dot(w2, h1, preferred_element_type=jnp.float32) + b2

    l0 = logits[0 * NS:1 * NS, :]
    l1 = logits[1 * NS:2 * NS, :]
    l2 = logits[2 * NS:3 * NS, :]
    m = jnp.maximum(jnp.maximum(l0, l1), l2)
    e0 = jnp.exp(l0 - m)                                # exp -> EUP slot (free-ish)
    e1 = jnp.exp(l1 - m)
    e2 = jnp.exp(l2 - m)
    inv = 1.0 / (e0 + e1 + e2)                          # exact recip (keeps 1e-5 tol)

    # Single lane-dense store of the whole (3*NS, TB) slab.
    recon_ref[...] = jnp.concatenate([e0 * inv, e1 * inv, e2 * inv], axis=0)


def _round_up(x, m):
    return ((x + m - 1) // m) * m


def decoder_forward(z, w1, b1, w2, b2, *, block_b=1024):
    """z: (B, Z_DIM) float32. Weights in PyTorch nn.Linear layout:
    w1 (H_DIM, Z_DIM), b1 (H_DIM,), w2 (3*NS, H_DIM), b2 (3*NS,).
    Returns x_recon of shape (B, 3, NS), matching Decoder.forward.
    """
    B = z.shape[0]
    assert z.shape[1] == Z_DIM

    # Batch tile: lane-dense (multiple of 128). 1024 amortizes per-step overhead
    # while keeping per-tile VMEM tiny (<1 MiB double-buffered).
    TB = min(block_b, _round_up(B, 128))
    Bp = _round_up(B, TB)
    grid = (Bp // TB,)

    # Batch -> lane (last) axis so every kernel load/store is 128-lane dense.
    zt = jnp.pad(z, ((0, Bp - B), (0, 0))).T                     # (Z_DIM, Bp)

    # Pack [W | b] so the kernel takes 3 inputs instead of 5 (fewer DMAs; the
    # constant index_map keeps them VMEM-resident across all grid steps).
    p1 = jnp.concatenate([w1, b1[:, None]], axis=1)              # (H_DIM, Z_DIM+1)
    p2 = jnp.concatenate([w2, b2[:, None]], axis=1)              # (3*NS, H_DIM+1)

    recon_t = pl.pallas_call(
        _decoder_kernel,
        out_shape=jax.ShapeDtypeStruct((3 * NS, Bp), jnp.float32),
        grid=grid,
        in_specs=[
            pl.BlockSpec((Z_DIM, TB), lambda i: (0, i)),          # stream batch tiles
            pl.BlockSpec((H_DIM, Z_DIM + 1), lambda i: (0, 0)),   # weights stay resident
            pl.BlockSpec((3 * NS, H_DIM + 1), lambda i: (0, 0)),
        ],
        out_specs=pl.BlockSpec((3 * NS, TB), lambda i: (0, i)),
        compiler_params=pltpu.CompilerParams(
            dimension_semantics=("parallel",),   # shard batch tiles across TCs (v7x)
            vmem_limit_bytes=32 * 1024 * 1024,
        ),
    )(zt, p1, p2)

    # Back to the PyTorch layout: (B, 3, NS). One cheap XLA transpose on tiny data.
    return recon_t[:, :B].T.reshape(B, 3, NS)


def init_params(key):
    """Deterministic init matching nn.Linear shapes (PyTorch (out, in) layout)."""
    ks = jax.random.split(key, 4)

    def lin(k_w, k_b, fan_in, fan_out):
        bound = 1.0 / jnp.sqrt(jnp.float32(fan_in))
        w = jax.random.uniform(k_w, (fan_out, fan_in), jnp.float32, -bound, bound)
        b = jax.random.uniform(k_b, (fan_out,), jnp.float32, -bound, bound)
        return w, b

    w1, b1 = lin(ks[0], ks[1], Z_DIM, H_DIM)     # decoder.fc1
    w2, b2 = lin(ks[2], ks[3], H_DIM, 3 * NS)    # decoder.fc2
    return w1, b1, w2, b2


if __name__ == "__main__":
    key = jax.random.PRNGKey(0)
    k_params, k_z = jax.random.split(key)

    B = 2
    w1, b1, w2, b2 = init_params(k_params)
    z = jax.random.normal(k_z, (B, Z_DIM), jnp.float32)

    x_recon = decoder_forward(z, w1, b1, w2, b2)
    jax.block_until_ready(x_recon)

    # Pure-JAX reference of the PyTorch forward.
    h1_ref = jnp.maximum(z @ w1.T + b1, 0.0)
    logits_ref = h1_ref @ w2.T + b2
    ref = jax.nn.softmax(logits_ref.reshape(B, 3, NS), axis=1)

    assert x_recon.shape == (B, 3, NS)
    assert jnp.allclose(x_recon, ref, atol=1e-5, rtol=1e-5)
    s = jnp.sum(x_recon, axis=1)
    assert jnp.allclose(s, jnp.ones_like(s), atol=1e-5)   # softmax over dim=1 sums to 1

    print("KERNEL_OK")
</pallas_src>

<mosaic_0001>
module attributes {stable_mosaic.version = 11 : i64} {
  func.func @_decoder_kernel(%arg0: i32, %arg1: memref<4x128xf32, #tpu.memory_space<vmem>>, %arg2: memref<26x5xf32, #tpu.memory_space<vmem>>, %arg3: memref<24x27xf32, #tpu.memory_space<vmem>>, %arg4: memref<24x128xf32, #tpu.memory_space<vmem>>) attributes {dimension_semantics = [#tpu.dimension_semantics<parallel>], iteration_bounds = array<i64: 1>, scalar_prefetch = 0 : i64, scratch_operands = 0 : i64, tpu.core_type = #tpu.core_type<tc>, window_params = [{transform_indices = @transform_0, window_bounds = array<i64: 4, 128>}, {pipeline_mode = #tpu.pipeline_mode<synchronous>, transform_indices = @transform_1, window_bounds = array<i64: 26, 5>}, {pipeline_mode = #tpu.pipeline_mode<synchronous>, transform_indices = @transform_2, window_bounds = array<i64: 24, 27>}, {transform_indices = @transform_3, window_bounds = array<i64: 24, 128>}]} {
    %c0 = arith.constant 0 : index
    %c0_0 = arith.constant 0 : index
    %0 = vector.load %arg1[%c0, %c0_0] : memref<4x128xf32, #tpu.memory_space<vmem>>, vector<4x128xf32>
    %c0_1 = arith.constant 0 : index
    %c0_2 = arith.constant 0 : index
    %1 = vector.load %arg2[%c0_1, %c0_2] : memref<26x5xf32, #tpu.memory_space<vmem>>, vector<26x5xf32>
    %2 = vector.extract_strided_slice %1 {offsets = [0, 0], sizes = [26, 4], strides = [1, 1]} : vector<26x5xf32> to vector<26x4xf32>
    %3 = vector.extract_strided_slice %1 {offsets = [0, 4], sizes = [26, 1], strides = [1, 1]} : vector<26x5xf32> to vector<26x1xf32>
    %c0_3 = arith.constant 0 : index
    %c0_4 = arith.constant 0 : index
    %4 = vector.load %arg3[%c0_3, %c0_4] : memref<24x27xf32, #tpu.memory_space<vmem>>, vector<24x27xf32>
    %5 = vector.extract_strided_slice %4 {offsets = [0, 0], sizes = [24, 26], strides = [1, 1]} : vector<24x27xf32> to vector<24x26xf32>
    %6 = vector.extract_strided_slice %4 {offsets = [0, 26], sizes = [24, 1], strides = [1, 1]} : vector<24x27xf32> to vector<24x1xf32>
    %cst = arith.constant dense<0.000000e+00> : vector<26x128xf32>
    %7 = tpu.matmul %2, %0, %cst {dimension_numbers = #tpu.dot_dimension_numbers<[1], [0], [0], [1], [0, 0, 1, 1], [], []>} : vector<26x4xf32>, vector<4x128xf32>, vector<26x128xf32> -> vector<26x128xf32>
    %8 = vector.broadcast %3 : vector<26x1xf32> to vector<26x128xf32>
    %9 = arith.addf %7, %8 : vector<26x128xf32>
    %cst_5 = arith.constant 0.000000e+00 : f32
    %10 = vector.broadcast %cst_5 : f32 to vector<26x128xf32>
    %11 = arith.maximumf %9, %10 : vector<26x128xf32>
    %cst_6 = arith.constant dense<0.000000e+00> : vector<24x128xf32>
    %12 = tpu.matmul %5, %11, %cst_6 {dimension_numbers = #tpu.dot_dimension_numbers<[1], [0], [0], [1], [0, 0, 1, 1], [], []>} : vector<24x26xf32>, vector<26x128xf32>, vector<24x128xf32> -> vector<24x128xf32>
    %13 = vector.broadcast %6 : vector<24x1xf32> to vector<24x128xf32>
    %14 = arith.addf %12, %13 : vector<24x128xf32>
    %15 = vector.extract_strided_slice %14 {offsets = [0, 0], sizes = [8, 128], strides = [1, 1]} : vector<24x128xf32> to vector<8x128xf32>
    %16 = vector.extract_strided_slice %14 {offsets = [8, 0], sizes = [8, 128], strides = [1, 1]} : vector<24x128xf32> to vector<8x128xf32>
    %17 = vector.extract_strided_slice %14 {offsets = [16, 0], sizes = [8, 128], strides = [1, 1]} : vector<24x128xf32> to vector<8x128xf32>
    %18 = arith.maximumf %15, %16 : vector<8x128xf32>
    %19 = arith.maximumf %18, %17 : vector<8x128xf32>
    %20 = arith.subf %15, %19 : vector<8x128xf32>
    %21 = math.exp %20 : vector<8x128xf32>
    %22 = arith.subf %16, %19 : vector<8x128xf32>
    %23 = math.exp %22 : vector<8x128xf32>
    %24 = arith.subf %17, %19 : vector<8x128xf32>
    %25 = math.exp %24 : vector<8x128xf32>
    %26 = arith.addf %21, %23 : vector<8x128xf32>
    %27 = arith.addf %26, %25 : vector<8x128xf32>
    %cst_7 = arith.constant 1.000000e+00 : f32
    %28 = vector.broadcast %cst_7 : f32 to vector<8x128xf32>
    %29 = arith.divf %28, %27 : vector<8x128xf32>
    %30 = arith.mulf %21, %29 : vector<8x128xf32>
    %31 = arith.mulf %23, %29 : vector<8x128xf32>
    %32 = arith.mulf %25, %29 : vector<8x128xf32>
    %33 = tpu.concatenate %30, %31, %32 in 0 : vector<8x128xf32>, vector<8x128xf32>, vector<8x128xf32> -> vector<24x128xf32>
    %c0_8 = arith.constant 0 : index
    %c0_9 = arith.constant 0 : index
    %34 = vector.load %arg4[%c0_8, %c0_9] : memref<24x128xf32, #tpu.memory_space<vmem>>, vector<24x128xf32>
    tpu.vector_store %arg4[%c0_8, %c0_9], %33 {strides = array<i32>} : memref<24x128xf32, #tpu.memory_space<vmem>>, vector<24x128xf32>,
    return
  }
  func.func @transform_0(%arg0: i32) -> (i32, i32) {
    %c0_i32 = arith.constant 0 : i32
    %c0_i32_0 = arith.constant 0 : i32
    return %c0_i32, %arg0 : i32, i32
  }
  func.func @transform_1(%arg0: i32) -> (i32, i32) {
    %c0_i32 = arith.constant 0 : i32
    %c0_i32_0 = arith.constant 0 : i32
    %c0_i32_1 = arith.constant 0 : i32
    return %c0_i32, %c0_i32_0 : i32, i32
  }
  func.func @transform_2(%arg0: i32) -> (i32, i32) {
    %c0_i32 = arith.constant 0 : i32
    %c0_i32_0 = arith.constant 0 : i32
    %c0_i32_1 = arith.constant 0 : i32
    return %c0_i32, %c0_i32_0 : i32, i32
  }
  func.func @transform_3(%arg0: i32) -> (i32, i32) {
    %c0_i32 = arith.constant 0 : i32
    %c0_i32_0 = arith.constant 0 : i32
    return %c0_i32, %arg0 : i32, i32
  }
}

</mosaic_0001>

<bundles_post_ra>
// kernel: tpu_custom_call.1
= control target key start
LH: loop header
LB: loop body
LE: loop exit
PB: predicated region body
PF: predicated region fallthrough
CT: control target
= control target key end

     0   :  { %vm52_vm0 = vcmask 1043456   ;;  %vm43_vm1 = vcmask 31744   ;;  %s302_s0 = inlined_call_operand.vmem [shape: f32[4,128], index: 0, kind: input, shape index: {}]   ;;  %s303_s1 = inlined_call_operand.vmem [shape: f32[26,5], index: 1, kind: input, shape index: {}]   ;;  %s304_s2 = inlined_call_operand.vmem [shape: f32[24,27], index: 2, kind: input, shape index: {}]   ;;  %s305_s3 = inlined_call_operand.hbm [shape: f32[24,128], index: 3, kind: output, shape index: {}]  }
   0x1   :  { %v15_v0 = vld [vmem:[%s302_s0] sm:$0xf]  ;;  %v18_v1 = vld [vmem:[%s303_s1 + $0x10] sm:$0xff]  ;;  %v19_v3 = vld [vmem:[%s303_s1 + $0x18] sm:$0x3] }
   0x2   :  { %v16_v2 = vld [vmem:[%s303_s1] sm:$0xff]  ;;  %202 = vmatpush.msk.msra.mxu2 %vm52_vm0, %v15_v0  ;;  %193 = vmatpush.msk.msra.mxu0 %vm52_vm0, %v15_v0  ;;  %v17_v4 = vld [vmem:[%s303_s1 + $0x8] sm:$0xff] }
   0x3   :  { %8 = vsyncpa [#allocation3], 0  ;;  %196 = vmatmul.msk.f32.vlgmr.msra.gmra.mxu2 %vm43_vm1, %v18_v1  ;;  %194 = vmatmul.msk.f32.vlgmr.msra.gmra.mxu0 %vm43_vm1, %v16_v2  ;;  %v250_v5 = vmov 4   ;;  %v20_v7 = vld [vmem:[%s304_s2] sm:$0xff]  ;;  %v22_v8 = vld [vmem:[%s304_s2 + $0x10] sm:$0xff]  ;;  %v251_v9 = vmov 26  }
   0x4   :  { %212 = vset.pattern.permute.xlu0 %v250_v5  ;;  %213 = vset.pattern.permute.xlu1 %v250_v5  ;;  %v21_v13 = vld [vmem:[%s304_s2 + $0x8] sm:$0xff]  ;;  %vm111_vm2 = vcmask 1041408   ;;  %vm104_vm3 = vcmask 211968   ;;  %s252_s2 = smov [#allocation2]   ;;  %s181_s29 = sshll.u32 %s305_s3, 4  ;;  %s182_s29 = int_to_ptr.hbm [resolvable:$true] %s181_s29 }
   0x5   :  { %40 = vperm.xlu0 %212, %v19_v3   ;;  %30 = vperm.xlu1 %213, %v17_v4   ;;  %s179_s26 = sshll.u32 %s252_s2, 4  ;;  %s253_s30 = smov 128   ;;  %s180_s26 = int_to_ptr.vmem [resolvable:$true] %s179_s26 }
   0x6   :  { %214 = vset.pattern.permute.xlu2 %v251_v9  ;;  %s254_s4 = smov 8  }
   0x7   :  { %91 = vperm.xlu2 %214, %v20_v7  }
   0xb   :  { %197 = vmatmul.msk.f32.gmra.mxu2 %vm43_vm1, %v19_v3  ;;  %195 = vmatmul.msk.f32.gmra.mxu0 %vm43_vm1, %v17_v4 }
   0xd   :  { %35 = vperm.xlu0 %212, %v18_v1   ;;  %25 = vperm.xlu1 %213, %v16_v2  }
   0xf   :  { %96 = vperm.xlu2 %214, %v21_v13  }
  0x15   :  { %215 = vset.pattern.permute.xlu0 %v251_v9 }
  0x16   :  { %101 = vperm.xlu0 %215, %v22_v8  }
  0x61   :  { %v92_v26 = vpop.permute.xlu2 %91 }
  0x69   :  { %v97_v28 = vpop.permute.xlu2 %96 }
  0x77   :  { %v41_v6 = vpop.permute.xlu0 %40  ;;  %v31_v11 = vpop.permute.xlu1 %30 }
  0x7f   :  { %v36_v14 = vpop.permute.xlu0 %35  ;;  %v26_v19 = vpop.permute.xlu1 %25 }
  0x80   :  { %v73_v10 = vpop.f32.mrf.mxu0 }
  0x81   :  { %v74_v23 = vadd.f32 %v73_v10, %v26_v19 }
  0x83   :  { %v85_v25 = vmax.f32 %v74_v23, 0.0 }
  0x86   :  { %v79_v12 = vpop.f32.mrf.mxu2 }
  0x87   :  { %v80_v17 = vadd.f32 %v79_v12, %v36_v14 }
  0x88   :  { %v76_v15 = vpop.f32.mrf.mxu0  ;;  %v102_v31 = vpop.permute.xlu0 %101 }
  0x89   :  { %v77_v20 = vadd.f32 %v76_v15, %v31_v11  ;;  %v87_v22 = vmax.f32 %v80_v17, 0.0 }
  0x8b   :  { %v86_v24 = vmax.f32 %v77_v20, 0.0 }
  0x8e   :  { %v82_v16 = vpop.f32.mrf.mxu2 }
  0x8f   :  { %v83_v18 = vadd.f32 %v82_v16, %v41_v6 }
  0x91   :  { %v88_v21 = vmax.f32 %v83_v18, 0.0 }
  0x93   :  { %198 = vmatpush.msk.msra.mxu1 %vm111_vm2, %v88_v21  ;;  %203 = vmatpush.msk.msra.mxu3 %vm111_vm2, %v88_v21 }
  0x95   :  { %128 = vmatpush.msra.mxu1 %v87_v22  ;;  %204 = vmatpush.msra.mxu3 %v87_v22 }
  0x97   :  { %129 = vmatpush.msra.mxu1 %v86_v24  ;;  %205 = vmatpush.msra.mxu3 %v86_v24 }
  0x99   :  { %130 = vmatpush.msra.mxu1 %v85_v25  ;;  %206 = vmatpush.msra.mxu3 %v85_v25 }
  0x9a   :  { %200 = vmatmul.msk.f32.vlgmr.msra.gmra.mxu3 %vm104_vm3, %v21_v13  ;;  %199 = vmatmul.msk.f32.vlgmr.msra.gmra.mxu1 %vm104_vm3, %v20_v7 }
  0xa2   :  { %201 = vmatmul.msk.f32.gmra.mxu3 %vm104_vm3, %v22_v8 }
 0x117   :  { %v132_v29 = vpop.f32.mrf.mxu1 }
 0x118   :  { %v133_v32 = vadd.f32 %v132_v29, %v92_v26 }
 0x11d   :  { %v135_v27 = vpop.f32.mrf.mxu3 }
 0x11e   :  { %v136_v30 = vadd.f32 %v135_v27, %v97_v28 }
 0x120   :  { %v141_v34 = vmax.f32 %v133_v32, %v136_v30 }
 0x125   :  { %v138_v33 = vpop.f32.mrf.mxu3 }
 0x126   :  { %v139_v35 = vadd.f32 %v138_v33, %v102_v31 }
 0x128   :  { %v142_v36 = vmax.f32 %v141_v34, %v139_v35 }
 0x12a   :  { %v143_v37 = vsub.f32 %v133_v32, %v142_v36  ;;  %v146_v38 = vsub.f32 %v136_v30, %v142_v36  ;;  %v149_v39 = vsub.f32 %v139_v35, %v142_v36 }
 0x12c   :  { %v144_v40 = vmul.f32 1.442695, %v143_v37  ;;  %v147_v41 = vmul.f32 1.442695, %v146_v38  ;;  %v150_v42 = vmul.f32 1.442695, %v149_v39 }
 0x12e   :  { %216 = vpow2.f32 %v144_v40 }
 0x12f   :  { %218 = vpow2.f32 %v147_v41 }
 0x130   :  { %220 = vpow2.f32 %v150_v42 }
 0x134   :  { %v217_v43 = vpop.eup %216 }
 0x135   :  { %v219_v44 = vpop.eup %218 }
 0x136   :  { %v152_v45 = vadd.f32 %v219_v44, %v217_v43  ;;  %v221_v46 = vpop.eup %220 }
 0x138   :  { %v153_v47 = vadd.f32 %v221_v46, %v152_v45 }
 0x13a   :  { %222 = vrcp.f32 %v153_v47  ;;  %v165_v51 = vand.u32 2147483648, %v153_v47  ;;  %v163_v53 = vand.u32 2147483647, %v153_v47  ;;  %vm159_vm5 = vweird.f32 %v153_v47 }
 0x13c   :  { %v166_v55 = vor.u32 1.1754944e-38, %v165_v51  ;;  %vm164_vm7 = vcmp.eq.f32.partialorder %v163_v53, 8.507059e+37 }
 0x140   :  { %v223_v48 = vpop.eup %222 }
 0x141   :  { %v155_v49 = vmul.f32 %v223_v48, %v153_v47  ;;  %vm160_vm4 = vweird.f32 %v223_v48 }
 0x142   :  { %vm161_vm6 = vmor %vm159_vm5, %vm160_vm4 }
 0x143   :  { %v156_v50 = vsub.f32 1.0, %v155_v49 }
 0x145   :  { %v157_v52 = vmul.f32 %v223_v48, %v156_v50 }
 0x147   :  { %v158_v54 = vadd.f32 %v223_v48, %v157_v52 }
 0x149   :  { %v162_v56 = vsel %vm161_vm6, %v223_v48, %v158_v54 }
 0x14a   :  { %v167_v57 = vsel %vm164_vm7, %v166_v55, %v162_v56 }
 0x14b   :  { %v169_v58 = vmul.f32 %v217_v43, %v167_v57  ;;  %v170_v59 = vmul.f32 %v219_v44, %v167_v57  ;;  %v171_v60 = vmul.f32 %v221_v46, %v167_v57 }
 0x14d   :  { %174 = vst [vmem:[#allocation2 + $0x10] sm:$0xff] %v171_v60 }
 0x14e   :  { %172 = vst [vmem:[#allocation2] sm:$0xff] %v169_v58 }
 0x14f   :  { %173 = vst [vmem:[#allocation2 + $0x8] sm:$0xff] %v170_v59 }
 0x150   :  { %187 = dma.vmem_to_hbm [thread:$0]  %s180_s26, 384, %s182_s29, [#allocation3], %s253_s30, %s253_s30, %s254_s4  }
 0x151   :  { %248 = dma.done.wait [#allocation3], 384  }
 0x152   :  { %249 = vsyncadd [#allocation3], 4294966912 }
 0x153   :  { %192 = vsyncpa [#allocation3], 1 }

</bundles_post_ra>
